<compile_context>
chip_gen: v7x
topology: tpu7x:2x2x1
jax: 0.10.0
libtpu: 0.0.40
codegen_flags: <defaults>
</compile_context>

<pallas_src>
import functools

import jax
import jax.numpy as jnp
from jax.experimental import pallas as pl
from jax.experimental.pallas import tpu as pltpu


def gating_kernel(x_ref, w1_ref, b1_ref, w2_ref, b2_ref, o_ref):
    # fc1: bf16 MXU inputs, f32 accumulation.
    h = jnp.dot(x_ref[...].astype(jnp.bfloat16), w1_ref[...],
                preferred_element_type=jnp.float32)
    h = jnp.maximum(h + b1_ref[...], 0.0)            # bias + ReLU in f32

    # TODO(synk): Dropout is identity here (inference/eval semantics); training
    # mode would need pltpu.prng_seed + pltpu.stateful_bernoulli and 1/(1-p).

    # fc2: bf16 MXU inputs, f32 accumulation. Zero-padded hidden columns of h
    # hit zero rows of W2 -> contribute exactly 0.
    logits = jnp.dot(h.astype(jnp.bfloat16), w2_ref[...],
                     preferred_element_type=jnp.float32)
    logits = logits + b2_ref[...]                    # padded experts get -1e30

    # softmax over experts (torch dim=1 == last axis), numerically stable.
    m = jnp.max(logits, axis=-1, keepdims=True)
    e = jnp.exp(logits - m)                          # padded cols underflow to 0
    denom = jnp.sum(e, axis=-1, keepdims=True)
    o_ref[...] = (e * pl.reciprocal(denom, approx=True)).astype(o_ref.dtype)


def _round_up(n, m):
    return ((n + m - 1) // m) * m


@functools.partial(jax.jit, static_argnames=("block_b",))
def gating_network(x, w1, b1, w2, b2, *, block_b=None):
    """x: (B, input_size) f32; w1: (input_size, hidden); b1: (hidden,);
    w2: (hidden, num_experts); b2: (num_experts,). Returns (B, num_experts) f32.
    Weights are already stored transposed to (in, out) layout (PyTorch keeps
    (out, in))."""
    B, input_size = x.shape
    hidden = w1.shape[1]
    num_experts = w2.shape[1]

    # Lane-dense padded widths (multiples of 128).
    h_pad = _round_up(hidden, 128)
    e_pad = _round_up(num_experts, 128)

    # Pre-cast weights to bf16 (halves their VMEM/DMA footprint) and zero-pad.
    # Padded expert columns get a large *finite* negative bias so softmax gives
    # them ~0 without inf-inf -> NaN.
    w1p = jnp.zeros((input_size, h_pad), jnp.bfloat16).at[:, :hidden].set(
        w1.astype(jnp.bfloat16))
    b1p = jnp.zeros((1, h_pad), jnp.float32).at[:, :hidden].set(
        b1.astype(jnp.float32))
    w2p = jnp.zeros((h_pad, e_pad), jnp.bfloat16).at[:hidden, :num_experts].set(
        w2.astype(jnp.bfloat16))
    b2p = jnp.full((1, e_pad), -1e30, jnp.float32).at[:, :num_experts].set(
        b2.astype(jnp.float32))

    # Batch tile: multiple of 8 (f32 sublane) or the full batch. A partial last
    # tile is safe because every row's softmax is independent.
    if block_b is None:
        block_b = B if B <= 256 else 256
    grid = (pl.cdiv(B, block_b),)

    out_padded = pl.pallas_call(
        gating_kernel,
        out_shape=jax.ShapeDtypeStruct((B, e_pad), jnp.float32),
        grid=grid,
        in_specs=[
            pl.BlockSpec((block_b, input_size), lambda i: (i, 0)),  # x tile (pipelined)
            pl.BlockSpec((input_size, h_pad), lambda i: (0, 0)),    # W1 (resident)
            pl.BlockSpec((1, h_pad), lambda i: (0, 0)),             # b1 (resident)
            pl.BlockSpec((h_pad, e_pad), lambda i: (0, 0)),         # W2 (resident)
            pl.BlockSpec((1, e_pad), lambda i: (0, 0)),             # b2 (resident)
        ],
        out_specs=pl.BlockSpec((block_b, e_pad), lambda i: (i, 0)),
        compiler_params=pltpu.CompilerParams(
            dimension_semantics=("parallel",),     # shard batch across v7x's 2 TCs
            vmem_limit_bytes=32 * 1024 * 1024,     # explicit; fits v5e/v6e/v7x
        ),
    )(x, w1p, b1p, w2p, b2p)

    # Drop padded expert columns (the in-kernel store itself stays 128-lane dense).
    return out_padded[:, :num_experts]


def _reference_f32(x, w1, b1, w2, b2):
    h = jnp.maximum(x @ w1 + b1, 0.0)
    return jax.nn.softmax(h @ w2 + b2, axis=1)


def _reference_bf16(x, w1, b1, w2, b2):
    # Mirrors the kernel's precision: bf16 MXU inputs, f32 accumulation/softmax.
    h = jnp.dot(x.astype(jnp.bfloat16), w1.astype(jnp.bfloat16),
                preferred_element_type=jnp.float32) + b1
    h = jnp.maximum(h, 0.0)
    logits = jnp.dot(h.astype(jnp.bfloat16), w2.astype(jnp.bfloat16),
                     preferred_element_type=jnp.float32) + b2
    return jax.nn.softmax(logits, axis=1)


if __name__ == "__main__":
    # Small shapes consistent with the module's forward; batch large enough that
    # the grid actually has >1 step (block_b defaults to 256 -> grid=(2,)).
    batch, input_size, hidden_size, num_experts = 512, 16, 32, 4
    dropout_rate = 0.1  # eval-mode identity

    key = jax.random.PRNGKey(0)
    kx, k1, kb1, k2, kb2 = jax.random.split(key, 5)

    x = jax.random.normal(kx, (batch, input_size), dtype=jnp.float32)

    # nn.Linear-style init (uniform +-1/sqrt(fan_in)), stored as (in, out).
    lim1 = 1.0 / jnp.sqrt(input_size)
    w1 = jax.random.uniform(k1, (input_size, hidden_size), jnp.float32, -lim1, lim1)
    b1 = jax.random.uniform(kb1, (hidden_size,), jnp.float32, -lim1, lim1)
    lim2 = 1.0 / jnp.sqrt(hidden_size)
    w2 = jax.random.uniform(k2, (hidden_size, num_experts), jnp.float32, -lim2, lim2)
    b2 = jax.random.uniform(kb2, (num_experts,), jnp.float32, -lim2, lim2)

    out = gating_network(x, w1, b1, w2, b2)
    out = jax.block_until_ready(out)
    assert out.shape == (batch, num_experts)

    # Strict check vs a reference with matching bf16-MXU precision.
    ref16 = _reference_bf16(x, w1, b1, w2, b2)
    assert jnp.allclose(out, ref16, atol=1e-3, rtol=1e-3), "mismatch vs bf16 reference"

    # Loose check vs the pure-f32 PyTorch-equivalent reference (bf16 MXU inputs).
    ref32 = _reference_f32(x, w1, b1, w2, b2)
    assert jnp.allclose(out, ref32, atol=2e-2, rtol=2e-2), "mismatch vs f32 reference"

    # Rows form a probability distribution (small slack for approx reciprocal).
    assert jnp.allclose(jnp.sum(out, axis=1), 1.0, atol=2e-3), "rows must sum to 1"

    print("KERNEL_OK")
</pallas_src>

<mosaic_0001>
module attributes {stable_mosaic.version = 11 : i64} {
  func.func @gating_kernel(%arg0: i32, %arg1: memref<256x16xf32, #tpu.memory_space<vmem>>, %arg2: memref<16x128xbf16, #tpu.memory_space<vmem>>, %arg3: memref<1x128xf32, #tpu.memory_space<vmem>>, %arg4: memref<128x128xbf16, #tpu.memory_space<vmem>>, %arg5: memref<1x128xf32, #tpu.memory_space<vmem>>, %arg6: memref<256x128xf32, #tpu.memory_space<vmem>>) attributes {dimension_semantics = [#tpu.dimension_semantics<parallel>], iteration_bounds = array<i64: 2>, scalar_prefetch = 0 : i64, scratch_operands = 0 : i64, tpu.core_type = #tpu.core_type<tc>, window_params = [{transform_indices = @transform_0, window_bounds = array<i64: 256, 16>}, {pipeline_mode = #tpu.pipeline_mode<synchronous>, transform_indices = @transform_1, window_bounds = array<i64: 16, 128>}, {pipeline_mode = #tpu.pipeline_mode<synchronous>, transform_indices = @transform_2, window_bounds = array<i64: 1, 128>}, {pipeline_mode = #tpu.pipeline_mode<synchronous>, transform_indices = @transform_3, window_bounds = array<i64: 128, 128>}, {pipeline_mode = #tpu.pipeline_mode<synchronous>, transform_indices = @transform_4, window_bounds = array<i64: 1, 128>}, {transform_indices = @transform_5, window_bounds = array<i64: 256, 128>}]} {
    %c0 = arith.constant 0 : index
    %c0_0 = arith.constant 0 : index
    %0 = vector.load %arg1[%c0, %c0_0] : memref<256x16xf32, #tpu.memory_space<vmem>>, vector<256x16xf32>
    %1 = arith.truncf %0 : vector<256x16xf32> to vector<256x16xbf16>
    %c0_1 = arith.constant 0 : index
    %c0_2 = arith.constant 0 : index
    %2 = vector.load %arg2[%c0_1, %c0_2] : memref<16x128xbf16, #tpu.memory_space<vmem>>, vector<16x128xbf16>
    %cst = arith.constant dense<0.000000e+00> : vector<256x128xf32>
    %3 = tpu.matmul %1, %2, %cst {dimension_numbers = #tpu.dot_dimension_numbers<[1], [0], [0], [1], [0, 0, 1, 1], [], []>} : vector<256x16xbf16>, vector<16x128xbf16>, vector<256x128xf32> -> vector<256x128xf32>
    %c0_3 = arith.constant 0 : index
    %c0_4 = arith.constant 0 : index
    %4 = vector.load %arg3[%c0_3, %c0_4] : memref<1x128xf32, #tpu.memory_space<vmem>>, vector<1x128xf32>
    %5 = vector.broadcast %4 : vector<1x128xf32> to vector<256x128xf32>
    %6 = arith.addf %3, %5 : vector<256x128xf32>
    %cst_5 = arith.constant 0.000000e+00 : f32
    %7 = vector.broadcast %cst_5 : f32 to vector<256x128xf32>
    %8 = arith.maximumf %6, %7 : vector<256x128xf32>
    %9 = arith.truncf %8 : vector<256x128xf32> to vector<256x128xbf16>
    %c0_6 = arith.constant 0 : index
    %c0_7 = arith.constant 0 : index
    %10 = vector.load %arg4[%c0_6, %c0_7] : memref<128x128xbf16, #tpu.memory_space<vmem>>, vector<128x128xbf16>
    %cst_8 = arith.constant dense<0.000000e+00> : vector<256x128xf32>
    %11 = tpu.matmul %9, %10, %cst_8 {dimension_numbers = #tpu.dot_dimension_numbers<[1], [0], [0], [1], [0, 0, 1, 1], [], []>} : vector<256x128xbf16>, vector<128x128xbf16>, vector<256x128xf32> -> vector<256x128xf32>
    %c0_9 = arith.constant 0 : index
    %c0_10 = arith.constant 0 : index
    %12 = vector.load %arg5[%c0_9, %c0_10] : memref<1x128xf32, #tpu.memory_space<vmem>>, vector<1x128xf32>
    %13 = vector.broadcast %12 : vector<1x128xf32> to vector<256x128xf32>
    %14 = arith.addf %11, %13 : vector<256x128xf32>
    %cst_11 = arith.constant dense<0xFF800000> : vector<256xf32>
    %15 = vector.multi_reduction <maximumf>, %14, %cst_11 [1] : vector<256x128xf32> to vector<256xf32>
    %16 = vector.shape_cast %15 : vector<256xf32> to vector<256x1xf32>
    %17 = vector.broadcast %16 : vector<256x1xf32> to vector<256x128xf32>
    %18 = arith.subf %14, %17 : vector<256x128xf32>
    %19 = math.exp %18 : vector<256x128xf32>
    %cst_12 = arith.constant dense<0.000000e+00> : vector<256xf32>
    %20 = vector.multi_reduction <add>, %19, %cst_12 [1] : vector<256x128xf32> to vector<256xf32>
    %21 = vector.shape_cast %20 : vector<256xf32> to vector<256x1xf32>
    %22 = tpu.reciprocal %21 {approx = true} : vector<256x1xf32> -> vector<256x1xf32>
    %23 = vector.broadcast %22 : vector<256x1xf32> to vector<256x128xf32>
    %24 = arith.mulf %19, %23 : vector<256x128xf32>
    %c0_13 = arith.constant 0 : index
    %c0_14 = arith.constant 0 : index
    %25 = vector.load %arg6[%c0_13, %c0_14] : memref<256x128xf32, #tpu.memory_space<vmem>>, vector<256x128xf32>
    tpu.vector_store %arg6[%c0_13, %c0_14], %24 {strides = array<i32>} : memref<256x128xf32, #tpu.memory_space<vmem>>, vector<256x128xf32>,
    return
  }
  func.func @transform_0(%arg0: i32) -> (i32, i32) {
    %c0_i32 = arith.constant 0 : i32
    %c0_i32_0 = arith.constant 0 : i32
    return %arg0, %c0_i32 : i32, i32
  }
  func.func @transform_1(%arg0: i32) -> (i32, i32) {
    %c0_i32 = arith.constant 0 : i32
    %c0_i32_0 = arith.constant 0 : i32
    %c0_i32_1 = arith.constant 0 : i32
    return %c0_i32, %c0_i32_0 : i32, i32
  }
  func.func @transform_2(%arg0: i32) -> (i32, i32) {
    %c0_i32 = arith.constant 0 : i32
    %c0_i32_0 = arith.constant 0 : i32
    %c0_i32_1 = arith.constant 0 : i32
    return %c0_i32, %c0_i32_0 : i32, i32
  }
  func.func @transform_3(%arg0: i32) -> (i32, i32) {
    %c0_i32 = arith.constant 0 : i32
    %c0_i32_0 = arith.constant 0 : i32
    %c0_i32_1 = arith.constant 0 : i32
    return %c0_i32, %c0_i32_0 : i32, i32
  }
  func.func @transform_4(%arg0: i32) -> (i32, i32) {
    %c0_i32 = arith.constant 0 : i32
    %c0_i32_0 = arith.constant 0 : i32
    %c0_i32_1 = arith.constant 0 : i32
    return %c0_i32, %c0_i32_0 : i32, i32
  }
  func.func @transform_5(%arg0: i32) -> (i32, i32) {
    %c0_i32 = arith.constant 0 : i32
    %c0_i32_0 = arith.constant 0 : i32
    return %arg0, %c0_i32 : i32, i32
  }
}

</mosaic_0001>

<bundles_post_ra>
// kernel: gating_network.1
= control target key start
LH: loop header
LB: loop body
LE: loop exit
PB: predicated region body
PF: predicated region fallthrough
CT: control target
= control target key end

     0   :  { %s1518_s18 = smov 0   ;;  %s1983_s0 = inlined_call_operand.vmem [shape: f32[512,16], index: 0, kind: input, shape index: {}]   ;;  %s1984_s1 = inlined_call_operand.vmem [shape: bf16[16,128], index: 1, kind: input, shape index: {}]   ;;  %s1985_s2 = inlined_call_operand.vmem [shape: f32[1,128], index: 2, kind: input, shape index: {}]   ;;  %s1986_s3 = inlined_call_operand.vmem [shape: bf16[128,128], index: 3, kind: input, shape index: {}]   ;;  %s1987_s4 = inlined_call_operand.vmem [shape: f32[1,128], index: 4, kind: input, shape index: {}]   ;;  %s1988_s5 = inlined_call_operand.vmem [shape: f32[512,128], index: 5, kind: output, shape index: {}]  }
   0x1 LB: > { %s1158_s19 = sadd.s32 4294967295, %s1486_s18   ;;  %p1162_p0 = scmp.ge.s32.totalorder %s1486_s18, 1  ;;  %s1486_s18 = sphi %s1518_s18, %s15_s18  }
   0x2   : > { %p188_p1 = scmp.lt.s32.totalorder %s1486_s18, 3 }
   0x4   : > { %p189_p2 = pnand %p1162_p0, %p188_p1 }
   0x5   : > { %v1343_v0 = vld [vmem:[%s1984_s1] sm:$0xff] (!%p189_p2)   ;;  %s1163_s22 = sshll.u32 (!%p189_p2), %s1158_s19, 5  ;;  %v1345_v2 = vld [vmem:[%s1986_s3 + $0x8] sm:$0xff] (!%p189_p2)   ;;  %v1346_v3 = vld [vmem:[%s1986_s3 + $0x10] sm:$0xff] (!%p189_p2)   ;;  %vm292_vm0 = vcmask (!%p189_p2), 130048  }
   0x6   : > { %192 = sbr.rel (%p189_p2) target bundleno = 833 (0x341), region = 40  ;;  %p217_p3 = scmp.lt.s32.totalorder (!%p189_p2), %s1163_s22, 63  ;;  %1237 = vmatprep.subr.bf16.mxu0 (!%p189_p2), %v1343_v0  ;;  %v1344_v1 = vld [vmem:[%s1986_s3] sm:$0xff] (!%p189_p2)   ;;  %v1347_v15 = vld [vmem:[%s1986_s3 + $0x18] sm:$0xff] (!%p189_p2)   ;;  %v1349_v23 = vld [vmem:[%s1986_s3 + $0x28] sm:$0xff] (!%p189_p2)  }
   0x7   : > { %1238 = vmatpush3.bf16.msra.mxu0 (!%p189_p2), %v1343_v0  ;;  %1319 = vmatprep.subr.bf16.mxu1 (!%p189_p2), %v1344_v1  ;;  %v1348_v20 = vld [vmem:[%s1986_s3 + $0x20] sm:$0xff] (!%p189_p2)   ;;  %v1350_v28 = vld [vmem:[%s1986_s3 + $0x30] sm:$0xff] (!%p189_p2)   ;;  %v1351_v56 = vld [vmem:[%s1986_s3 + $0x38] sm:$0xff] (!%p189_p2)  }
   0x8   : > { %1271 = vmatprep.subr.bf16.mxu0 (!%p189_p2), %v1344_v1  ;;  %1327 = vmatpush3.bf16.msra.mxu1 (!%p189_p2), %v1344_v1  ;;  %v1614_v57 = vld [vmem:[%s1985_s2] ss:$0 sm:$0xff] (!%p189_p2) }
   0x9   : > { %1320 = vmatprep.subr.bf16.mxu1 (!%p189_p2), %v1345_v2 }
   0xc   : > { %1328 = vmatpush3.bf16.msra.mxu1 (!%p189_p2), %v1345_v2 }
   0xd   : > { %s1990_s22 = smov (!%p217_p3, %s1163_s22), 63  ;;  %1321 = vmatprep.subr.bf16.mxu1 %v1346_v3 }
   0xe   : > { %s1164_s27 = sshll.u32 %s1990_s22, 3 }
   0xf   : > { %s1543_s30 = scalar_lea.vmem %s1983_s0, %s1164_s27  ;;  %s1914_s26 = scalar_lea.vmem %s1988_s5, %s1164_s27 }
  0x10   : > { %v229_v4 = vld [vmem:[%s1543_s30] sm:$0xff]  ;;  %v230_v5 = vld [vmem:[%s1543_s30 + $0x8] sm:$0xff]  ;;  %v231_v6 = vld [vmem:[%s1543_s30 + $0x10] sm:$0xff]  ;;  %1329 = vmatpush3.bf16.msra.mxu1 %v1346_v3 }
  0x11   : > { %v261_v7 = vpack.c.bf16 %v230_v5, %v229_v4  ;;  %v232_v8 = vld [vmem:[%s1543_s30 + $0x18] sm:$0xff]  ;;  %v233_v9 = vld [vmem:[%s1543_s30 + $0x20] sm:$0xff]  ;;  %v234_v10 = vld [vmem:[%s1543_s30 + $0x28] sm:$0xff]  ;;  %1322 = vmatprep.subr.bf16.mxu1 %v1347_v15 }
  0x12   : > { %v262_v11 = vpack.c.bf16 %v232_v8, %v231_v6  ;;  %v263_v12 = vpack.c.bf16 %v234_v10, %v233_v9  ;;  %v235_v13 = vld [vmem:[%s1543_s30 + $0x30] sm:$0xff]  ;;  %v236_v14 = vld [vmem:[%s1543_s30 + $0x38] sm:$0xff]  ;;  %v237_v16 = vld [vmem:[%s1543_s30 + $0x40] sm:$0xff] }
  0x13   : > { %1239 = vmatprep.mubr.msk.bf16.mxu0 %vm292_vm0, %v261_v7  ;;  %v238_v17 = vld [vmem:[%s1543_s30 + $0x48] sm:$0xff]  ;;  %v264_v18 = vpack.c.bf16 %v236_v14, %v235_v13  ;;  %v239_v21 = vld [vmem:[%s1543_s30 + $0x50] sm:$0xff]  ;;  %v240_v22 = vld [vmem:[%s1543_s30 + $0x58] sm:$0xff] }
  0x14   : > { %1240 = vmatmul.mubr.msk.bf16.vlgmr.msra.gmra.mrb[0].mxu0 %vm292_vm0, %v262_v11  ;;  %v265_v19 = vpack.c.bf16 %v238_v17, %v237_v16  ;;  %1330 = vmatpush3.bf16.msra.mxu1 %v1347_v15  ;;  %v241_v24 = vld [vmem:[%s1543_s30 + $0x60] sm:$0xff]  ;;  %v242_v25 = vld [vmem:[%s1543_s30 + $0x68] sm:$0xff]  ;;  %v266_v26 = vpack.c.bf16 %v240_v22, %v239_v21  ;;  %v243_v29 = vld [vmem:[%s1543_s30 + $0x70] sm:$0xff] }
  0x15   : > { %1243 = vmatprep.mubr.msk.bf16.mxu0 %vm292_vm0, %v263_v12  ;;  %1272 = vmatpush3.bf16.msra.mxu0 %v1344_v1  ;;  %v267_v27 = vpack.c.bf16 %v242_v25, %v241_v24  ;;  %v244_v30 = vld [vmem:[%s1543_s30 + $0x78] sm:$0xff]  ;;  %v245_v31 = vld [vmem:[%s1543_s30 + $0x80] sm:$0xff]  ;;  %v246_v32 = vld [vmem:[%s1543_s30 + $0x88] sm:$0xff] }
  0x16   : > { %1273 = vmatprep.subr.bf16.mxu0 %v1345_v2  ;;  %1323 = vmatprep.subr.bf16.mxu1 %v1348_v20  ;;  %v268_v33 = vpack.c.bf16 %v244_v30, %v243_v29  ;;  %v269_v34 = vpack.c.bf16 %v246_v32, %v245_v31  ;;  %v247_v35 = vld [vmem:[%s1543_s30 + $0x90] sm:$0xff]  ;;  %v248_v36 = vld [vmem:[%s1543_s30 + $0x98] sm:$0xff]  ;;  %v249_v37 = vld [vmem:[%s1543_s30 + $0xa0] sm:$0xff] }
  0x17   : > { %v250_v38 = vld [vmem:[%s1543_s30 + $0xa8] sm:$0xff]  ;;  %v270_v39 = vpack.c.bf16 %v248_v36, %v247_v35  ;;  %v251_v41 = vld [vmem:[%s1543_s30 + $0xb0] sm:$0xff]  ;;  %v252_v42 = vld [vmem:[%s1543_s30 + $0xb8] sm:$0xff] }
  0x18   : > { %1331 = vmatpush3.bf16.msra.mxu1 %v1348_v20  ;;  %v271_v40 = vpack.c.bf16 %v250_v38, %v249_v37  ;;  %v253_v43 = vld [vmem:[%s1543_s30 + $0xc0] sm:$0xff]  ;;  %v254_v44 = vld [vmem:[%s1543_s30 + $0xc8] sm:$0xff]  ;;  %v272_v45 = vpack.c.bf16 %v252_v42, %v251_v41  ;;  %v255_v47 = vld [vmem:[%s1543_s30 + $0xd0] sm:$0xff] }
  0x19   : > { %1274 = vmatpush3.bf16.msra.mxu0 %v1345_v2  ;;  %1324 = vmatprep.subr.bf16.mxu1 %v1349_v23  ;;  %v273_v46 = vpack.c.bf16 %v254_v44, %v253_v43  ;;  %v256_v48 = vld [vmem:[%s1543_s30 + $0xd8] sm:$0xff]  ;;  %v257_v49 = vld [vmem:[%s1543_s30 + $0xe0] sm:$0xff]  ;;  %v258_v50 = vld [vmem:[%s1543_s30 + $0xe8] sm:$0xff] }
  0x1a   : > { %1275 = vmatprep.subr.bf16.mxu0 %v1346_v3  ;;  %v274_v51 = vpack.c.bf16 %v256_v48, %v255_v47  ;;  %v275_v52 = vpack.c.bf16 %v258_v50, %v257_v49  ;;  %v259_v53 = vld [vmem:[%s1543_s30 + $0xf0] sm:$0xff]  ;;  %v260_v54 = vld [vmem:[%s1543_s30 + $0xf8] sm:$0xff] }
  0x1b   : > { %v276_v55 = vpack.c.bf16 %v260_v54, %v259_v53 }
  0x1c   : > { %1244 = vmatmul.mubr.msk.bf16.gmra.mrb[4].mxu0 %vm292_vm0, %v264_v18  ;;  %1332 = vmatpush3.bf16.msra.mxu1 %v1349_v23 }
  0x1d   : > { %1247 = vmatprep.mubr.msk.bf16.mxu0 %vm292_vm0, %v265_v19  ;;  %1276 = vmatpush3.bf16.msra.mxu0 %v1346_v3 }
  0x1e   : > { %1277 = vmatprep.subr.bf16.mxu0 %v1347_v15  ;;  %1325 = vmatprep.subr.bf16.mxu1 %v1350_v28 }
  0x20   : > { %1333 = vmatpush3.bf16.msra.mxu1 %v1350_v28 }
  0x21   : > { %1278 = vmatpush3.bf16.msra.mxu0 %v1347_v15  ;;  %1326 = vmatprep.subr.bf16.mxu1 %v1351_v56 }
  0x22   : > { %1279 = vmatprep.subr.bf16.mxu0 %v1348_v20 }
  0x24   : > { %1248 = vmatmul.mubr.msk.bf16.gmra.mrb[8].mxu0 %vm292_vm0, %v266_v26  ;;  %1334 = vmatpush3.bf16.msra.mxu1 %v1351_v56 }
  0x25   : > { %1251 = vmatprep.mubr.msk.bf16.mxu0 %vm292_vm0, %v267_v27  ;;  %1280 = vmatpush3.bf16.msra.mxu0 %v1348_v20 }
  0x26   : > { %1281 = vmatprep.subr.bf16.mxu0 %v1349_v23 }
  0x29   : > { %1282 = vmatpush3.bf16.msra.mxu0 %v1349_v23 }
  0x2a   : > { %1283 = vmatprep.subr.bf16.mxu0 %v1350_v28 }
  0x2c   : > { %1252 = vmatmul.mubr.msk.bf16.gmra.mrb[12].mxu0 %vm292_vm0, %v268_v33 }
  0x2d   : > { %1255 = vmatprep.mubr.msk.bf16.mxu0 %vm292_vm0, %v269_v34  ;;  %1284 = vmatpush3.bf16.msra.mxu0 %v1350_v28 }
  0x2e   : > { %1285 = vmatprep.subr.bf16.mxu0 %v1351_v56 }
  0x31   : > { %1286 = vmatpush3.bf16.msra.mxu0 %v1351_v56 }
  0x34   : > { %1256 = vmatmul.mubr.msk.bf16.gmra.mrb[16].mxu0 %vm292_vm0, %v270_v39 }
  0x35   : > { %1259 = vmatprep.mubr.msk.bf16.mxu0 %vm292_vm0, %v271_v40 }
  0x3c   : > { %1260 = vmatmul.mubr.msk.bf16.gmra.mrb[20].mxu0 %vm292_vm0, %v272_v45 }
  0x3d   : > { %1263 = vmatprep.mubr.msk.bf16.mxu0 %vm292_vm0, %v273_v46 }
  0x44   : > { %1264 = vmatmul.mubr.msk.bf16.gmra.mrb[24].mxu0 %vm292_vm0, %v274_v51 }
  0x45   : > { %1267 = vmatprep.mubr.msk.bf16.mxu0 %vm292_vm0, %v275_v52 }
  0x4c   : > { %1268 = vmatmul.mubr.msk.bf16.gmra.mrb[28].mxu0 %vm292_vm0, %v276_v55 }
  0xe7   : > { %v1241_v58 = vpop.f32.mrb[0].mxu0 }
  0xe8   : > { %v384_v59 = vadd.f32 %v1241_v58, %v1614_v57  ;;  %v375_v60 = vpop.f32.mrb[1].mxu0 }
  0xe9   : > { %v376_v61 = vadd.f32 %v1614_v57, %v375_v60  ;;  %v1242_v62 = vpop.f32.mrb[2].mxu0 }
  0xea   : > { %v387_v63 = vadd.f32 %v1242_v62, %v1614_v57  ;;  %v378_v0 = vpop.f32.mrb[3].mxu0  ;;  %v504_v2 = vmax.f32 %v384_v59, 0.0 }
  0xeb   : > { %v379_v1 = vadd.f32 %v1614_v57, %v378_v0  ;;  %v502_v4 = vmax.f32 %v376_v61, 0.0 }
  0xec   : > { %v505_v3 = vmax.f32 %v387_v63, 0.0 }
  0xed   : > { %v503_v5 = vmax.f32 %v379_v1, 0.0 }
  0xee   : > { %v535_v6 = vpack.c.bf16 %v505_v3, %v504_v2 }
  0xef   : > { %v534_v7 = vpack.c.bf16 %v503_v5, %v502_v4  ;;  %v1245_v8 = vpop.f32.mrb[4].mxu0 }
  0xf0   : > { %v400_v9 = vadd.f32 %v1245_v8, %v1614_v57  ;;  %v391_v10 = vpop.f32.mrb[5].mxu0 }
  0xf1   : > { %v392_v11 = vadd.f32 %v1614_v57, %v391_v10  ;;  %v1246_v12 = vpop.f32.mrb[6].mxu0  ;;  %1287 = vmatprep.mubr.bf16.mxu0 %v534_v7 }
  0xf2   : > { %v508_v13 = vmax.f32 %v400_v9, 0.0  ;;  %v403_v14 = vadd.f32 %v1246_v12, %v1614_v57  ;;  %v394_v15 = vpop.f32.mrb[7].mxu0  ;;  %1288 = vmatmul.mubr.bf16.vlgmr.msra.gmra.mrb[32].mxu0 %v535_v6 }
  0xf3   : > { %v395_v16 = vadd.f32 %v1614_v57, %v394_v15  ;;  %v506_v18 = vmax.f32 %v392_v11, 0.0 }
  0xf4   : > { %v509_v17 = vmax.f32 %v403_v14, 0.0 }
  0xf5   : > { %v507_v19 = vmax.f32 %v395_v16, 0.0 }
  0xf6   : > { %v537_v20 = vpack.c.bf16 %v509_v17, %v508_v13 }
  0xf7   : > { %v1249_v21 = vpop.f32.mrb[8].mxu0  ;;  %v536_v22 = vpack.c.bf16 %v507_v19, %v506_v18 }
  0xf8   : > { %v416_v23 = vadd.f32 %v1249_v21, %v1614_v57  ;;  %v407_v24 = vpop.f32.mrb[9].mxu0 }
  0xf9   : > { %v408_v25 = vadd.f32 %v1614_v57, %v407_v24  ;;  %v1250_v26 = vpop.f32.mrb[10].mxu0  ;;  %1291 = vmatprep.mubr.bf16.mxu1 %v536_v22 }
  0xfa   : > { %v512_v27 = vmax.f32 %v416_v23, 0.0  ;;  %v419_v28 = vadd.f32 %v1250_v26, %v1614_v57  ;;  %v410_v29 = vpop.f32.mrb[11].mxu0  ;;  %1292 = vmatmul.mubr.bf16.vlgmr.msra.gmra.mrb[0].mxu1 %v537_v20 }
  0xfb   : > { %v411_v30 = vadd.f32 %v1614_v57, %v410_v29  ;;  %v510_v32 = vmax.f32 %v408_v25, 0.0 }
  0xfc   : > { %v513_v31 = vmax.f32 %v419_v28, 0.0 }
  0xfd   : > { %v511_v33 = vmax.f32 %v411_v30, 0.0 }
  0xfe   : > { %v539_v34 = vpack.c.bf16 %v513_v31, %v512_v27 }
  0xff   : > { %v538_v35 = vpack.c.bf16 %v511_v33, %v510_v32  ;;  %v1253_v36 = vpop.f32.mrb[12].mxu0 }
 0x100   : > { %v432_v37 = vadd.f32 %v1253_v36, %v1614_v57  ;;  %v423_v38 = vpop.f32.mrb[13].mxu0 }
 0x101   : > { %v424_v39 = vadd.f32 %v1614_v57, %v423_v38  ;;  %v1254_v40 = vpop.f32.mrb[14].mxu0  ;;  %1295 = vmatprep.mubr.bf16.mxu1 %v538_v35 }
 0x102   : > { %v516_v41 = vmax.f32 %v432_v37, 0.0  ;;  %v435_v42 = vadd.f32 %v1254_v40, %v1614_v57  ;;  %v426_v43 = vpop.f32.mrb[15].mxu0  ;;  %1296 = vmatmul.mubr.bf16.gmra.mrb[4].mxu1 %v539_v34 }
 0x103   : > { %v427_v44 = vadd.f32 %v1614_v57, %v426_v43  ;;  %v514_v46 = vmax.f32 %v424_v39, 0.0  ;;  %v1651_v43 = vld [vmem:[%s1987_s4] ss:$0 sm:$0xff] }
 0x104   : > { %v517_v45 = vmax.f32 %v435_v42, 0.0 }
 0x105   : > { %v515_v47 = vmax.f32 %v427_v44, 0.0 }
 0x106   : > { %v541_v48 = vpack.c.bf16 %v517_v45, %v516_v41 }
 0x107   : > { %v540_v49 = vpack.c.bf16 %v515_v47, %v514_v46  ;;  %v1257_v50 = vpop.f32.mrb[16].mxu0 }
 0x108   : > { %v448_v51 = vadd.f32 %v1257_v50, %v1614_v57  ;;  %v439_v52 = vpop.f32.mrb[17].mxu0 }
 0x109   : > { %v440_v53 = vadd.f32 %v1614_v57, %v439_v52  ;;  %v1258_v54 = vpop.f32.mrb[18].mxu0  ;;  %1299 = vmatprep.mubr.bf16.mxu1 %v540_v49 }
 0x10a   : > { %v520_v55 = vmax.f32 %v448_v51, 0.0  ;;  %v451_v56 = vadd.f32 %v1258_v54, %v1614_v57  ;;  %v442_v58 = vpop.f32.mrb[19].mxu0  ;;  %1300 = vmatmul.mubr.bf16.gmra.mrb[8].mxu1 %v541_v48 }
 0x10b   : > { %v443_v59 = vadd.f32 %v1614_v57, %v442_v58  ;;  %v518_v61 = vmax.f32 %v440_v53, 0.0 }
 0x10c   : > { %v521_v60 = vmax.f32 %v451_v56, 0.0 }
 0x10d   : > { %v519_v62 = vmax.f32 %v443_v59, 0.0 }
 0x10e   : > { %v543_v63 = vpack.c.bf16 %v521_v60, %v520_v55 }
 0x10f   : > { %v542_v0 = vpack.c.bf16 %v519_v62, %v518_v61  ;;  %v1261_v1 = vpop.f32.mrb[20].mxu0 }
 0x110   : > { %v464_v2 = vadd.f32 %v1261_v1, %v1614_v57  ;;  %v455_v3 = vpop.f32.mrb[21].mxu0 }
 0x111   : > { %v456_v4 = vadd.f32 %v1614_v57, %v455_v3  ;;  %v1262_v5 = vpop.f32.mrb[22].mxu0  ;;  %1303 = vmatprep.mubr.bf16.mxu1 %v542_v0 }
 0x112   : > { %v524_v6 = vmax.f32 %v464_v2, 0.0  ;;  %v467_v7 = vadd.f32 %v1262_v5, %v1614_v57  ;;  %v458_v8 = vpop.f32.mrb[23].mxu0  ;;  %1304 = vmatmul.mubr.bf16.gmra.mrb[12].mxu1 %v543_v63 }
 0x113   : > { %v459_v9 = vadd.f32 %v1614_v57, %v458_v8  ;;  %v522_v11 = vmax.f32 %v456_v4, 0.0 }
 0x114   : > { %v525_v10 = vmax.f32 %v467_v7, 0.0 }
 0x115   : > { %v523_v12 = vmax.f32 %v459_v9, 0.0 }
 0x116   : > { %v545_v13 = vpack.c.bf16 %v525_v10, %v524_v6 }
 0x117   : > { %v544_v14 = vpack.c.bf16 %v523_v12, %v522_v11  ;;  %v1265_v15 = vpop.f32.mrb[24].mxu0 }
 0x118   : > { %v480_v16 = vadd.f32 %v1265_v15, %v1614_v57  ;;  %v471_v17 = vpop.f32.mrb[25].mxu0 }
 0x119   : > { %v472_v18 = vadd.f32 %v1614_v57, %v471_v17  ;;  %v1266_v19 = vpop.f32.mrb[26].mxu0  ;;  %1307 = vmatprep.mubr.bf16.mxu1 %v544_v14 }
 0x11a   : > { %v528_v20 = vmax.f32 %v480_v16, 0.0  ;;  %v483_v21 = vadd.f32 %v1266_v19, %v1614_v57  ;;  %v474_v22 = vpop.f32.mrb[27].mxu0  ;;  %1308 = vmatmul.mubr.bf16.gmra.mrb[16].mxu1 %v545_v13 }
 0x11b   : > { %v475_v23 = vadd.f32 %v1614_v57, %v474_v22  ;;  %v526_v25 = vmax.f32 %v472_v18, 0.0 }
 0x11c   : > { %v529_v24 = vmax.f32 %v483_v21, 0.0 }
 0x11d   : > { %v527_v26 = vmax.f32 %v475_v23, 0.0 }
 0x11e   : > { %v547_v27 = vpack.c.bf16 %v529_v24, %v528_v20 }
 0x11f   : > { %v546_v28 = vpack.c.bf16 %v527_v26, %v526_v25  ;;  %v1269_v29 = vpop.f32.mrb[28].mxu0 }
 0x120   : > { %v496_v30 = vadd.f32 %v1269_v29, %v1614_v57  ;;  %v487_v31 = vpop.f32.mrb[29].mxu0 }
 0x121   : > { %v488_v32 = vadd.f32 %v1614_v57, %v487_v31  ;;  %v1270_v33 = vpop.f32.mrb[30].mxu0  ;;  %1311 = vmatprep.mubr.bf16.mxu1 %v546_v28 }
 0x122   : > { %v532_v34 = vmax.f32 %v496_v30, 0.0  ;;  %v499_v35 = vadd.f32 %v1270_v33, %v1614_v57  ;;  %v490_v36 = vpop.f32.mrb[31].mxu0  ;;  %1312 = vmatmul.mubr.bf16.gmra.mrb[20].mxu1 %v547_v27 }
 0x123   : > { %v491_v37 = vadd.f32 %v1614_v57, %v490_v36  ;;  %v530_v39 = vmax.f32 %v488_v32, 0.0 }
 0x124   : > { %v533_v38 = vmax.f32 %v499_v35, 0.0 }
 0x125   : > { %v531_v40 = vmax.f32 %v491_v37, 0.0 }
 0x126   : > { %v549_v41 = vpack.c.bf16 %v533_v38, %v532_v34 }
 0x127   : > { %v548_v42 = vpack.c.bf16 %v531_v40, %v530_v39 }
 0x129   : > { %1315 = vmatprep.mubr.bf16.mxu1 %v548_v42 }
 0x12a   : > { %1316 = vmatmul.mubr.bf16.gmra.mrb[24].mxu1 %v549_v41 }
 0x1c5   : > { %v1289_v44 = vpop.f32.mrb[32].mxu0 }
 0x1c6   : > { %v1654_v45 = vadd.f32 %v1289_v44, %v1651_v43  ;;  %v655_v46 = vpop.f32.mrb[33].mxu0 }
 0x1c7   : > { %v1657_v47 = vadd.f32 %v1651_v43, %v655_v46  ;;  %v1290_v57 = vpop.f32.mrb[34].mxu0 }
 0x1c8   : > { %786 = vmax.xlane.f32.xlu1 %v1654_v45  ;;  %v658_v48 = vpop.f32.mrb[35].mxu0  ;;  %v1662_v49 = vadd.f32 %v1290_v57, %v1651_v43 }
 0x1c9   : > { %782 = vmax.xlane.f32.xlu0 %v1657_v47  ;;  %v1665_v50 = vadd.f32 %v1651_v43, %v658_v48 }
 0x1cc   : > { %788 = vmax.xlane.f32.xlu1 %v1662_v49 }
 0x1cd   : > { %v1293_v51 = vpop.f32.mrb[0].mxu1  ;;  %784 = vmax.xlane.f32.xlu0 %v1665_v50 }
 0x1ce   : > { %v1670_v52 = vadd.f32 %v1293_v51, %v1651_v43  ;;  %v671_v53 = vpop.f32.mrb[1].mxu1 }
 0x1cf   : > { %v1294_v54 = vpop.f32.mrb[2].mxu1  ;;  %v1678_v58 = vadd.f32 %v1651_v43, %v671_v53 }
 0x1d0   : > { %v1673_v55 = vadd.f32 %v1294_v54, %v1651_v43  ;;  %v674_v56 = vpop.f32.mrb[3].mxu1 }
 0x1d1   : > { %794 = vmax.xlane.f32.xlu0 %v1670_v52  ;;  %v1681_v59 = vadd.f32 %v1651_v43, %v674_v56 }
 0x1d2   : > { %796 = vmax.xlane.f32.xlu1 %v1673_v55 }
 0x1d5   : > { %v1297_v60 = vpop.f32.mrb[4].mxu1  ;;  %790 = vmax.xlane.f32.xlu0 %v1678_v58 }
 0x1d6   : > { %v1685_v61 = vadd.f32 %v1297_v60, %v1651_v43  ;;  %v687_v62 = vpop.f32.mrb[5].mxu1  ;;  %792 = vmax.xlane.f32.xlu1 %v1681_v59 }
 0x1d7   : > { %v1298_v63 = vpop.f32.mrb[6].mxu1  ;;  %v1694_v2 = vadd.f32 %v1651_v43, %v687_v62 }
 0x1d8   : > { %v1689_v0 = vadd.f32 %v1298_v63, %v1651_v43  ;;  %v690_v1 = vpop.f32.mrb[7].mxu1 }
 0x1d9   : > { %802 = vmax.xlane.f32.xlu0 %v1685_v61  ;;  %v1697_v3 = vadd.f32 %v1651_v43, %v690_v1 }
 0x1da   : > { %804 = vmax.xlane.f32.xlu1 %v1689_v0 }
 0x1dd   : > { %v1301_v4 = vpop.f32.mrb[8].mxu1  ;;  %798 = vmax.xlane.f32.xlu0 %v1694_v2 }
 0x1de   : > { %v1701_v5 = vadd.f32 %v1301_v4, %v1651_v43  ;;  %v703_v6 = vpop.f32.mrb[9].mxu1  ;;  %800 = vmax.xlane.f32.xlu1 %v1697_v3 }
 0x1df   : > { %v1302_v7 = vpop.f32.mrb[10].mxu1  ;;  %v1710_v10 = vadd.f32 %v1651_v43, %v703_v6 }
 0x1e0   : > { %v1705_v8 = vadd.f32 %v1302_v7, %v1651_v43  ;;  %v706_v9 = vpop.f32.mrb[11].mxu1 }
 0x1e1   : > { %810 = vmax.xlane.f32.xlu0 %v1701_v5  ;;  %v1713_v11 = vadd.f32 %v1651_v43, %v706_v9 }
 0x1e2   : > { %812 = vmax.xlane.f32.xlu1 %v1705_v8 }
 0x1e5   : > { %v1305_v12 = vpop.f32.mrb[12].mxu1  ;;  %806 = vmax.xlane.f32.xlu0 %v1710_v10 }
 0x1e6   : > { %v1717_v13 = vadd.f32 %v1305_v12, %v1651_v43  ;;  %v719_v14 = vpop.f32.mrb[13].mxu1  ;;  %808 = vmax.xlane.f32.xlu1 %v1713_v11 }
 0x1e7   : > { %v1306_v15 = vpop.f32.mrb[14].mxu1  ;;  %v1726_v18 = vadd.f32 %v1651_v43, %v719_v14 }
 0x1e8   : > { %v1721_v16 = vadd.f32 %v1306_v15, %v1651_v43  ;;  %v722_v17 = vpop.f32.mrb[15].mxu1 }
 0x1e9   : > { %818 = vmax.xlane.f32.xlu0 %v1717_v13  ;;  %v1729_v19 = vadd.f32 %v1651_v43, %v722_v17 }
 0x1ea   : > { %820 = vmax.xlane.f32.xlu1 %v1721_v16 }
 0x1ed   : > { %v1309_v20 = vpop.f32.mrb[16].mxu1  ;;  %814 = vmax.xlane.f32.xlu0 %v1726_v18 }
 0x1ee   : > { %v1733_v21 = vadd.f32 %v1309_v20, %v1651_v43  ;;  %v735_v22 = vpop.f32.mrb[17].mxu1  ;;  %816 = vmax.xlane.f32.xlu1 %v1729_v19 }
 0x1ef   : > { %v1310_v23 = vpop.f32.mrb[18].mxu1  ;;  %v1742_v26 = vadd.f32 %v1651_v43, %v735_v22 }
 0x1f0   : > { %v1737_v24 = vadd.f32 %v1310_v23, %v1651_v43  ;;  %v738_v25 = vpop.f32.mrb[19].mxu1 }
 0x1f1   : > { %826 = vmax.xlane.f32.xlu0 %v1733_v21  ;;  %v1745_v27 = vadd.f32 %v1651_v43, %v738_v25 }
 0x1f2   : > { %828 = vmax.xlane.f32.xlu1 %v1737_v24 }
 0x1f5   : > { %v1313_v28 = vpop.f32.mrb[20].mxu1  ;;  %822 = vmax.xlane.f32.xlu0 %v1742_v26 }
 0x1f6   : > { %v1749_v29 = vadd.f32 %v1313_v28, %v1651_v43  ;;  %v751_v30 = vpop.f32.mrb[21].mxu1  ;;  %824 = vmax.xlane.f32.xlu1 %v1745_v27 }
 0x1f7   : > { %v1314_v31 = vpop.f32.mrb[22].mxu1  ;;  %v1758_v34 = vadd.f32 %v1651_v43, %v751_v30 }
 0x1f8   : > { %v1753_v32 = vadd.f32 %v1314_v31, %v1651_v43  ;;  %v754_v33 = vpop.f32.mrb[23].mxu1 }
 0x1f9   : > { %834 = vmax.xlane.f32.xlu0 %v1749_v29  ;;  %v1761_v35 = vadd.f32 %v1651_v43, %v754_v33 }
 0x1fa   : > { %836 = vmax.xlane.f32.xlu1 %v1753_v32 }
 0x1fd   : > { %v1317_v36 = vpop.f32.mrb[24].mxu1  ;;  %830 = vmax.xlane.f32.xlu0 %v1758_v34 }
 0x1fe   : > { %v767_v37 = vpop.f32.mrb[25].mxu1  ;;  %832 = vmax.xlane.f32.xlu1 %v1761_v35  ;;  %v1773_v42 = vadd.f32 %v1317_v36, %v1651_v43 }
 0x1ff   : > { %v1766_v38 = vadd.f32 %v1651_v43, %v767_v37  ;;  %v1318_v39 = vpop.f32.mrb[26].mxu1 }
 0x200   : > { %v770_v40 = vpop.f32.mrb[27].mxu1  ;;  %v1777_v44 = vadd.f32 %v1318_v39, %v1651_v43 }
 0x201   : > { %v1769_v41 = vadd.f32 %v1651_v43, %v770_v40  ;;  %838 = vmax.xlane.f32.xlu0 %v1766_v38 }
 0x203   : > { %840 = vmax.xlane.f32.xlu1 %v1769_v41 }
 0x205   : > { %842 = vmax.xlane.f32.xlu0 %v1773_v42 }
 0x207   : > { %844 = vmax.xlane.f32.xlu1 %v1777_v44 }
 0x255   : > { %v787_v46 = vpop.xlane.xlu1 %786 }
 0x256   : > { %v848_v57 = vsub.f32 %v1654_v45, %v787_v46  ;;  %v783_v48 = vpop.xlane.xlu0 %782 }
 0x257   : > { %v846_v51 = vsub.f32 %v1657_v47, %v783_v48 }
 0x258   : > { %v882_v53 = vmul.f32 1.442695, %v848_v57 }
 0x259   : > { %v878_v54 = vmul.f32 1.442695, %v846_v51  ;;  %v789_v56 = vpop.xlane.xlu1 %788 }
 0x25a   : > { %1352 = vpow2.f32 %v882_v53  ;;  %v849_v60 = vsub.f32 %v1662_v49, %v789_v56  ;;  %v785_v62 = vpop.xlane.xlu0 %784 }
 0x25b   : > { %v847_v43 = vsub.f32 %v1665_v50, %v785_v62  ;;  %1354 = vpow2.f32 %v878_v54 }
 0x25c   : > { %v884_v63 = vmul.f32 1.442695, %v849_v60 }
 0x25d   : > { %v880_v1 = vmul.f32 1.442695, %v847_v43 }
 0x25e   : > { %1356 = vpow2.f32 %v884_v63  ;;  %v795_v4 = vpop.xlane.xlu0 %794 }
 0x25f   : > { %v852_v6 = vsub.f32 %v1670_v52, %v795_v4  ;;  %v797_v45 = vpop.xlane.xlu1 %796  ;;  %1358 = vpow2.f32 %v880_v1 }
 0x260   : > { %v853_v7 = vsub.f32 %v1673_v55, %v797_v45 }
 0x261   : > { %v890_v47 = vmul.f32 1.442695, %v852_v6 }
 0x262   : > { %v892_v9 = vmul.f32 1.442695, %v853_v7  ;;  %v791_v12 = vpop.xlane.xlu0 %790 }
 0x263   : > { %1360 = vpow2.f32 %v890_v47  ;;  %v850_v49 = vsub.f32 %v1678_v58, %v791_v12  ;;  %v793_v14 = vpop.xlane.xlu1 %792 }
 0x264   : > { %v1788_v15 = vpop.eup %1352  ;;  %v851_v50 = vsub.f32 %v1681_v59, %v793_v14  ;;  %1362 = vpow2.f32 %v892_v9 }
 0x265   : > { %v886_v17 = vmul.f32 1.442695, %v850_v49  ;;  %946 = vadd.xlane.f32.xlu0 %v1788_v15  ;;  %v1792_v22 = vpop.eup %1354 }
 0x266   : > { %v888_v52 = vmul.f32 1.442695, %v851_v50  ;;  %v803_v20 = vpop.xlane.xlu0 %802 }
 0x267   : > { %1364 = vpow2.f32 %v886_v17  ;;  %v856_v55 = vsub.f32 %v1685_v61, %v803_v20  ;;  %v805_v23 = vpop.xlane.xlu1 %804 }
 0x268   : > { %v1795_v25 = vpop.eup %1356  ;;  %v857_v58 = vsub.f32 %v1689_v0, %v805_v23  ;;  %1366 = vpow2.f32 %v888_v52 }
 0x269   : > { %v898_v28 = vmul.f32 1.442695, %v856_v55  ;;  %948 = vadd.xlane.f32.xlu1 %v1795_v25  ;;  %942 = vadd.xlane.f32.xlu0 %v1792_v22  ;;  %v1801_v36 = vpop.eup %1358 }
 0x26a   : > { %v900_v59 = vmul.f32 1.442695, %v857_v58  ;;  %v799_v30 = vpop.xlane.xlu0 %798 }
 0x26b   : > { %1368 = vpow2.f32 %v898_v28  ;;  %v854_v31 = vsub.f32 %v1694_v2, %v799_v30  ;;  %v801_v33 = vpop.xlane.xlu1 %800 }
 0x26c   : > { %v855_v61 = vsub.f32 %v1697_v3, %v801_v33  ;;  %1370 = vpow2.f32 %v900_v59 }
 0x26d   : > { %v1804_v37 = vpop.eup %1360  ;;  %v894_v39 = vmul.f32 1.442695, %v854_v31  ;;  %944 = vadd.xlane.f32.xlu1 %v1801_v36 }
 0x26e   : > { %v896_v0 = vmul.f32 1.442695, %v855_v61  ;;  %954 = vadd.xlane.f32.xlu0 %v1804_v37  ;;  %v811_v40 = vpop.xlane.xlu0 %810  ;;  %v1809_v2 = vpop.eup %1362 }
 0x26f   : > { %1372 = vpow2.f32 %v894_v39  ;;  %v860_v46 = vsub.f32 %v1701_v5, %v811_v40  ;;  %v813_v57 = vpop.xlane.xlu1 %812 }
 0x270   : > { %v861_v48 = vsub.f32 %v1705_v8, %v813_v57  ;;  %1374 = vpow2.f32 %v896_v0 }
 0x271   : > { %v1812_v51 = vpop.eup %1364  ;;  %v906_v3 = vmul.f32 1.442695, %v860_v46  ;;  %956 = vadd.xlane.f32.xlu1 %v1809_v2 }
 0x272   : > { %v908_v53 = vmul.f32 1.442695, %v861_v48  ;;  %950 = vadd.xlane.f32.xlu0 %v1812_v51  ;;  %v807_v54 = vpop.xlane.xlu0 %806  ;;  %v1817_v5 = vpop.eup %1366 }
 0x273   : > { %1376 = vpow2.f32 %v906_v3  ;;  %v858_v56 = vsub.f32 %v1710_v10, %v807_v54  ;;  %v809_v60 = vpop.xlane.xlu1 %808 }
 0x274   : > { %v859_v62 = vsub.f32 %v1713_v11, %v809_v60  ;;  %1378 = vpow2.f32 %v908_v53 }
 0x275   : > { %v1820_v43 = vpop.eup %1368  ;;  %v902_v8 = vmul.f32 1.442695, %v858_v56  ;;  %952 = vadd.xlane.f32.xlu1 %v1817_v5 }
 0x276   : > { %v904_v63 = vmul.f32 1.442695, %v859_v62  ;;  %962 = vadd.xlane.f32.xlu0 %v1820_v43  ;;  %v819_v1 = vpop.xlane.xlu0 %818  ;;  %v1825_v10 = vpop.eup %1370 }
 0x277   : > { %1380 = vpow2.f32 %v902_v8  ;;  %v864_v4 = vsub.f32 %v1717_v13, %v819_v1  ;;  %v821_v6 = vpop.xlane.xlu1 %820 }
 0x278   : > { %v865_v45 = vsub.f32 %v1721_v16, %v821_v6  ;;  %1382 = vpow2.f32 %v904_v63 }
 0x279   : > { %v1828_v7 = vpop.eup %1372  ;;  %v914_v11 = vmul.f32 1.442695, %v864_v4  ;;  %964 = vadd.xlane.f32.xlu1 %v1825_v10 }
 0x27a   : > { %v916_v47 = vmul.f32 1.442695, %v865_v45  ;;  %958 = vadd.xlane.f32.xlu0 %v1828_v7  ;;  %v815_v9 = vpop.xlane.xlu0 %814  ;;  %v1833_v13 = vpop.eup %1374 }
 0x27b   : > { %1384 = vpow2.f32 %v914_v11  ;;  %v862_v12 = vsub.f32 %v1726_v18, %v815_v9  ;;  %v817_v49 = vpop.xlane.xlu1 %816 }
 0x27c   : > { %v863_v14 = vsub.f32 %v1729_v19, %v817_v49  ;;  %1386 = vpow2.f32 %v916_v47 }
 0x27d   : > { %v1836_v50 = vpop.eup %1376  ;;  %v910_v16 = vmul.f32 1.442695, %v862_v12  ;;  %960 = vadd.xlane.f32.xlu1 %v1833_v13 }
 0x27e   : > { %v912_v17 = vmul.f32 1.442695, %v863_v14  ;;  %970 = vadd.xlane.f32.xlu0 %v1836_v50  ;;  %v827_v52 = vpop.xlane.xlu0 %826  ;;  %v1841_v18 = vpop.eup %1378 }
 0x27f   : > { %1388 = vpow2.f32 %v910_v16  ;;  %v868_v20 = vsub.f32 %v1733_v21, %v827_v52  ;;  %v829_v55 = vpop.xlane.xlu1 %828 }
 0x280   : > { %v869_v23 = vsub.f32 %v1737_v24, %v829_v55  ;;  %1390 = vpow2.f32 %v912_v17 }
 0x281   : > { %v1844_v58 = vpop.eup %1380  ;;  %v922_v19 = vmul.f32 1.442695, %v868_v20  ;;  %972 = vadd.xlane.f32.xlu1 %v1841_v18 }
 0x282   : > { %v924_v28 = vmul.f32 1.442695, %v869_v23  ;;  %966 = vadd.xlane.f32.xlu0 %v1844_v58  ;;  %v823_v59 = vpop.xlane.xlu0 %822  ;;  %v1849_v21 = vpop.eup %1382 }
 0x283   : > { %1392 = vpow2.f32 %v922_v19  ;;  %v866_v30 = vsub.f32 %v1742_v26, %v823_v59  ;;  %v825_v31 = vpop.xlane.xlu1 %824 }
 0x284   : > { %v867_v33 = vsub.f32 %v1745_v27, %v825_v31  ;;  %1394 = vpow2.f32 %v924_v28 }
 0x285   : > { %v1852_v61 = vpop.eup %1384  ;;  %v918_v24 = vmul.f32 1.442695, %v866_v30  ;;  %968 = vadd.xlane.f32.xlu1 %v1849_v21 }
 0x286   : > { %v920_v39 = vmul.f32 1.442695, %v867_v33  ;;  %978 = vadd.xlane.f32.xlu0 %v1852_v61  ;;  %v835_v0 = vpop.xlane.xlu0 %834  ;;  %v1857_v26 = vpop.eup %1386 }
 0x287   : > { %1396 = vpow2.f32 %v918_v24  ;;  %v872_v40 = vsub.f32 %v1749_v29, %v835_v0  ;;  %v837_v46 = vpop.xlane.xlu1 %836 }
 0x288   : > { %v873_v57 = vsub.f32 %v1753_v32, %v837_v46  ;;  %1398 = vpow2.f32 %v920_v39 }
 0x289   : > { %v1860_v48 = vpop.eup %1388  ;;  %v930_v27 = vmul.f32 1.442695, %v872_v40  ;;  %980 = vadd.xlane.f32.xlu1 %v1857_v26 }
 0x28a   : > { %v932_v3 = vmul.f32 1.442695, %v873_v57  ;;  %974 = vadd.xlane.f32.xlu0 %v1860_v48  ;;  %v831_v53 = vpop.xlane.xlu0 %830  ;;  %v1865_v29 = vpop.eup %1390 }
 0x28b   : > { %1400 = vpow2.f32 %v930_v27  ;;  %v870_v54 = vsub.f32 %v1758_v34, %v831_v53  ;;  %v833_v56 = vpop.xlane.xlu1 %832 }
 0x28c   : > { %v871_v60 = vsub.f32 %v1761_v35, %v833_v56  ;;  %1402 = vpow2.f32 %v932_v3 }
 0x28d   : > { %v1868_v62 = vpop.eup %1392  ;;  %v926_v32 = vmul.f32 1.442695, %v870_v54  ;;  %976 = vadd.xlane.f32.xlu1 %v1865_v29 }
 0x28e   : > { %v928_v8 = vmul.f32 1.442695, %v871_v60  ;;  %986 = vadd.xlane.f32.xlu0 %v1868_v62  ;;  %v839_v63 = vpop.xlane.xlu0 %838  ;;  %v1873_v4 = vpop.eup %1394 }
 0x28f   : > { %1404 = vpow2.f32 %v926_v32  ;;  %v874_v1 = vsub.f32 %v1766_v38, %v839_v63 }
 0x290   : > { %v841_v34 = vpop.xlane.xlu1 %840  ;;  %1406 = vpow2.f32 %v928_v8 }
 0x291   : > { %v1875_v6 = vpop.eup %1396  ;;  %v934_v45 = vmul.f32 1.442695, %v874_v1  ;;  %v875_v35 = vsub.f32 %v1769_v41, %v841_v34  ;;  %988 = vadd.xlane.f32.xlu1 %v1873_v4 }
 0x292   : > { %982 = vadd.xlane.f32.xlu0 %v1875_v6  ;;  %v843_v11 = vpop.xlane.xlu0 %842  ;;  %v1881_v12 = vpop.eup %1398 }
 0x293   : > { %1408 = vpow2.f32 %v934_v45  ;;  %v936_v47 = vmul.f32 1.442695, %v875_v35  ;;  %v876_v9 = vsub.f32 %v1773_v42, %v843_v11 }
 0x294   : > { %v845_v38 = vpop.xlane.xlu1 %844 }
 0x295   : > { %v1883_v49 = vpop.eup %1400  ;;  %1410 = vpow2.f32 %v936_v47  ;;  %v938_v14 = vmul.f32 1.442695, %v876_v9  ;;  %v877_v16 = vsub.f32 %v1777_v44, %v845_v38  ;;  %984 = vadd.xlane.f32.xlu1 %v1881_v12 }
 0x296   : > { %994 = vadd.xlane.f32.xlu0 %v1883_v49  ;;  %v1888_v17 = vpop.eup %1402 }
 0x297   : > { %1412 = vpow2.f32 %v938_v14  ;;  %v940_v41 = vmul.f32 1.442695, %v877_v16 }
 0x299   : > { %v1890_v52 = vpop.eup %1404  ;;  %1414 = vpow2.f32 %v940_v41  ;;  %996 = vadd.xlane.f32.xlu1 %v1888_v17 }
 0x29a   : > { %990 = vadd.xlane.f32.xlu0 %v1890_v52  ;;  %v1894_v42 = vpop.eup %1406 }
 0x29d   : > { %v1896_v20 = vpop.eup %1408  ;;  %992 = vadd.xlane.f32.xlu1 %v1894_v42 }
 0x29e   : > { %998 = vadd.xlane.f32.xlu0 %v1896_v20 }
 0x29f   : > { %v1900_v44 = vpop.eup %1410 }
 0x2a1   : > { %v1902_v55 = vpop.eup %1412  ;;  %1000 = vadd.xlane.f32.xlu1 %v1900_v44 }
 0x2a2   : > { %1002 = vadd.xlane.f32.xlu0 %v1902_v55 }
 0x2a3   : > { %v1906_v23 = vpop.eup %1414 }
 0x2a5   : > { %1004 = vadd.xlane.f32.xlu1 %v1906_v23 }
 0x2f2   : > { %v947_v19 = vpop.xlane.xlu0 %946 }
 0x2f3   : > { %1416 = vrcp.f32 %v947_v19 }
 0x2f6   : > { %v949_v28 = vpop.xlane.xlu1 %948  ;;  %v943_v59 = vpop.xlane.xlu0 %942 }
 0x2f7   : > { %1418 = vrcp.f32 %v949_v28 }
 0x2f8   : > { %1420 = vrcp.f32 %v943_v59 }
 0x2fa   : > { %v945_v30 = vpop.xlane.xlu1 %944 }
 0x2fb   : > { %1422 = vrcp.f32 %v945_v30  ;;  %v955_v31 = vpop.xlane.xlu0 %954 }
 0x2fc   : > { %1424 = vrcp.f32 %v955_v31 }
 0x2fd   : > { %v1417_v33 = vpop.eup %1416 }
 0x2fe   : > { %v1040_v24 = vmul.f32 %v1417_v33, %v1788_v15  ;;  %v957_v39 = vpop.xlane.xlu1 %956 }
 0x2ff   : > { %1426 = vrcp.f32 %v957_v39  ;;  %v951_v0 = vpop.xlane.xlu0 %950 }
 0x300   : > { %1072 = vst [vmem:[%s1914_s26 + $0x10] sm:$0xff] %v1040_v24  ;;  %1428 = vrcp.f32 %v951_v0 }
 0x301   : > { %v1419_v40 = vpop.eup %1418 }
 0x302   : > { %v1421_v46 = vpop.eup %1420  ;;  %v1041_v57 = vmul.f32 %v1419_v40, %v1795_v25  ;;  %v953_v27 = vpop.xlane.xlu1 %952 }
 0x303   : > { %v1038_v3 = vmul.f32 %v1421_v46, %v1792_v22  ;;  %1430 = vrcp.f32 %v953_v27  ;;  %v963_v53 = vpop.xlane.xlu0 %962 }
 0x304   : > { %1073 = vst [vmem:[%s1914_s26 + $0x18] sm:$0xff] %v1041_v57  ;;  %1432 = vrcp.f32 %v963_v53 }
 0x305   : > { %v1423_v15 = vpop.eup %1422  ;;  %1070 = vst [vmem:[%s1914_s26] sm:$0xff] %v1038_v3 }
 0x306   : > { %v1425_v54 = vpop.eup %1424  ;;  %v1039_v56 = vmul.f32 %v1423_v15, %v1801_v36  ;;  %v965_v60 = vpop.xlane.xlu1 %964 }
 0x307   : > { %v1044_v32 = vmul.f32 %v1425_v54, %v1804_v37  ;;  %1434 = vrcp.f32 %v965_v60  ;;  %v959_v25 = vpop.xlane.xlu0 %958 }
 0x308   : > { %1071 = vst [vmem:[%s1914_s26 + $0x8] sm:$0xff] %v1039_v56  ;;  %1436 = vrcp.f32 %v959_v25 }
 0x309   : > { %v1427_v22 = vpop.eup %1426  ;;  %1076 = vst [vmem:[%s1914_s26 + $0x30] sm:$0xff] %v1044_v32 }
 0x30a   : > { %v1429_v8 = vpop.eup %1428  ;;  %v1045_v63 = vmul.f32 %v1427_v22, %v1809_v2  ;;  %v961_v1 = vpop.xlane.xlu1 %960 }
 0x30b   : > { %v1042_v34 = vmul.f32 %v1429_v8, %v1812_v51  ;;  %1438 = vrcp.f32 %v961_v1  ;;  %v971_v36 = vpop.xlane.xlu0 %970 }
 0x30c   : > { %1077 = vst [vmem:[%s1914_s26 + $0x38] sm:$0xff] %v1045_v63  ;;  %1440 = vrcp.f32 %v971_v36 }
 0x30d   : > { %v1431_v37 = vpop.eup %1430  ;;  %1074 = vst [vmem:[%s1914_s26 + $0x20] sm:$0xff] %v1042_v34 }
 0x30e   : > { %v1433_v45 = vpop.eup %1432  ;;  %v1043_v35 = vmul.f32 %v1431_v37, %v1817_v5  ;;  %v973_v11 = vpop.xlane.xlu1 %972 }
 0x30f   : > { %v1048_v47 = vmul.f32 %v1433_v45, %v1820_v43  ;;  %1442 = vrcp.f32 %v973_v11  ;;  %v967_v2 = vpop.xlane.xlu0 %966 }
 0x310   : > { %1075 = vst [vmem:[%s1914_s26 + $0x28] sm:$0xff] %v1043_v35  ;;  %1444 = vrcp.f32 %v967_v2 }
 0x311   : > { %v1435_v51 = vpop.eup %1434  ;;  %1080 = vst [vmem:[%s1914_s26 + $0x50] sm:$0xff] %v1048_v47 }
 0x312   : > { %v1437_v9 = vpop.eup %1436  ;;  %v1049_v38 = vmul.f32 %v1435_v51, %v1825_v10  ;;  %v969_v14 = vpop.xlane.xlu1 %968 }
 0x313   : > { %v1046_v16 = vmul.f32 %v1437_v9, %v1828_v7  ;;  %1446 = vrcp.f32 %v969_v14  ;;  %v979_v5 = vpop.xlane.xlu0 %978 }
 0x314   : > { %1081 = vst [vmem:[%s1914_s26 + $0x58] sm:$0xff] %v1049_v38  ;;  %1448 = vrcp.f32 %v979_v5 }
 0x315   : > { %v1439_v43 = vpop.eup %1438  ;;  %1078 = vst [vmem:[%s1914_s26 + $0x40] sm:$0xff] %v1046_v16 }
 0x316   : > { %v1441_v41 = vpop.eup %1440  ;;  %v1047_v19 = vmul.f32 %v1439_v43, %v1833_v13  ;;  %v981_v28 = vpop.xlane.xlu1 %980 }
 0x317   : > { %v1052_v59 = vmul.f32 %v1441_v41, %v1836_v50  ;;  %1450 = vrcp.f32 %v981_v28  ;;  %v975_v10 = vpop.xlane.xlu0 %974 }
 0x318   : > { %1079 = vst [vmem:[%s1914_s26 + $0x48] sm:$0xff] %v1047_v19  ;;  %1452 = vrcp.f32 %v975_v10 }
 0x319   : > { %v1443_v7 = vpop.eup %1442  ;;  %1084 = vst [vmem:[%s1914_s26 + $0x70] sm:$0xff] %v1052_v59 }
 0x31a   : > { %v1445_v30 = vpop.eup %1444  ;;  %v1053_v31 = vmul.f32 %v1443_v7, %v1841_v18  ;;  %v977_v33 = vpop.xlane.xlu1 %976 }
 0x31b   : > { %v1050_v24 = vmul.f32 %v1445_v30, %v1844_v58  ;;  %1454 = vrcp.f32 %v977_v33  ;;  %v987_v13 = vpop.xlane.xlu0 %986 }
 0x31c   : > { %1085 = vst [vmem:[%s1914_s26 + $0x78] sm:$0xff] %v1053_v31  ;;  %1456 = vrcp.f32 %v987_v13 }
 0x31d   : > { %v1447_v50 = vpop.eup %1446  ;;  %1082 = vst [vmem:[%s1914_s26 + $0x60] sm:$0xff] %v1050_v24 }
 0x31e   : > { %v1449_v39 = vpop.eup %1448  ;;  %v1051_v0 = vmul.f32 %v1447_v50, %v1849_v21  ;;  %v989_v40 = vpop.xlane.xlu1 %988 }
 0x31f   : > { %v1056_v46 = vmul.f32 %v1449_v39, %v1852_v61  ;;  %1458 = vrcp.f32 %v989_v40  ;;  %v983_v18 = vpop.xlane.xlu0 %982 }
 0x320   : > { %1083 = vst [vmem:[%s1914_s26 + $0x68] sm:$0xff] %v1051_v0  ;;  %1460 = vrcp.f32 %v983_v18 }
 0x321   : > { %v1451_v58 = vpop.eup %1450  ;;  %1088 = vst [vmem:[%s1914_s26 + $0x90] sm:$0xff] %v1056_v46 }
 0x322   : > { %v1453_v57 = vpop.eup %1452  ;;  %v1057_v27 = vmul.f32 %v1451_v58, %v1857_v26  ;;  %v985_v3 = vpop.xlane.xlu1 %984 }
 0x323   : > { %v1054_v53 = vmul.f32 %v1453_v57, %v1860_v48  ;;  %1462 = vrcp.f32 %v985_v3  ;;  %v995_v21 = vpop.xlane.xlu0 %994 }
 0x324   : > { %1089 = vst [vmem:[%s1914_s26 + $0x98] sm:$0xff] %v1057_v27  ;;  %1464 = vrcp.f32 %v995_v21 }
 0x325   : > { %v1455_v61 = vpop.eup %1454  ;;  %1086 = vst [vmem:[%s1914_s26 + $0x80] sm:$0xff] %v1054_v53 }
 0x326   : > { %v1457_v15 = vpop.eup %1456  ;;  %v1055_v54 = vmul.f32 %v1455_v61, %v1865_v29  ;;  %v997_v56 = vpop.xlane.xlu1 %996 }
 0x327   : > { %v1060_v60 = vmul.f32 %v1457_v15, %v1868_v62  ;;  %1466 = vrcp.f32 %v997_v56  ;;  %v991_v26 = vpop.xlane.xlu0 %990 }
 0x328   : > { %1087 = vst [vmem:[%s1914_s26 + $0x88] sm:$0xff] %v1055_v54  ;;  %1468 = vrcp.f32 %v991_v26 }
 0x329   : > { %v1459_v48 = vpop.eup %1458  ;;  %1092 = vst [vmem:[%s1914_s26 + $0xb0] sm:$0xff] %v1060_v60 }
 0x32a   : > { %v1461_v32 = vpop.eup %1460  ;;  %v1061_v25 = vmul.f32 %v1459_v48, %v1873_v4  ;;  %v993_v22 = vpop.xlane.xlu1 %992 }
 0x32b   : > { %v1058_v8 = vmul.f32 %v1461_v32, %v1875_v6  ;;  %1470 = vrcp.f32 %v993_v22  ;;  %v999_v29 = vpop.xlane.xlu0 %998 }
 0x32c   : > { %1093 = vst [vmem:[%s1914_s26 + $0xb8] sm:$0xff] %v1061_v25  ;;  %1472 = vrcp.f32 %v999_v29 }
 0x32d   : > { %v1463_v62 = vpop.eup %1462  ;;  %1090 = vst [vmem:[%s1914_s26 + $0xa0] sm:$0xff] %v1058_v8 }
 0x32e   : > { %v1465_v63 = vpop.eup %1464  ;;  %v1059_v1 = vmul.f32 %v1463_v62, %v1881_v12  ;;  %v1001_v34 = vpop.xlane.xlu1 %1000 }
 0x32f   : > { %v1064_v36 = vmul.f32 %v1465_v63, %v1883_v49  ;;  %1474 = vrcp.f32 %v1001_v34  ;;  %v1003_v4 = vpop.xlane.xlu0 %1002 }
 0x330   : > { %1091 = vst [vmem:[%s1914_s26 + $0xa8] sm:$0xff] %v1059_v1  ;;  %1476 = vrcp.f32 %v1003_v4 }
 0x331   : > { %v1467_v6 = vpop.eup %1466  ;;  %1096 = vst [vmem:[%s1914_s26 + $0xd0] sm:$0xff] %v1064_v36 }
 0x332   : > { %v1469_v37 = vpop.eup %1468  ;;  %v1065_v45 = vmul.f32 %v1467_v6, %v1888_v17  ;;  %v1005_v35 = vpop.xlane.xlu1 %1004 }
 0x333   : > { %v1062_v11 = vmul.f32 %v1469_v37, %v1890_v52  ;;  %1478 = vrcp.f32 %v1005_v35 }
 0x334   : > { %1097 = vst [vmem:[%s1914_s26 + $0xd8] sm:$0xff] %v1065_v45 }
 0x335   : > { %v1471_v12 = vpop.eup %1470  ;;  %1094 = vst [vmem:[%s1914_s26 + $0xc0] sm:$0xff] %v1062_v11 }
 0x336   : > { %v1473_v49 = vpop.eup %1472  ;;  %v1063_v47 = vmul.f32 %v1471_v12, %v1894_v42 }
 0x337   : > { %v1066_v2 = vmul.f32 %v1473_v49, %v1896_v20 }
 0x338   : > { %1095 = vst [vmem:[%s1914_s26 + $0xc8] sm:$0xff] %v1063_v47 }
 0x339   : > { %v1475_v51 = vpop.eup %1474  ;;  %1098 = vst [vmem:[%s1914_s26 + $0xe0] sm:$0xff] %v1066_v2 }
 0x33a   : > { %v1477_v9 = vpop.eup %1476  ;;  %v1067_v17 = vmul.f32 %v1475_v51, %v1900_v44 }
 0x33b   : > { %v1068_v38 = vmul.f32 %v1477_v9, %v1902_v55 }
 0x33c   : > { %1099 = vst [vmem:[%s1914_s26 + $0xe8] sm:$0xff] %v1067_v17 }
 0x33d   : > { %v1479_v52 = vpop.eup %1478  ;;  %1100 = vst [vmem:[%s1914_s26 + $0xf0] sm:$0xff] %v1068_v38 }
 0x33e   : > { %v1069_v14 = vmul.f32 %v1479_v52, %v1906_v23 }
 0x340   : > { %1101 = vst [vmem:[%s1914_s26 + $0xf8] sm:$0xff] %v1069_v14 }
 0x341 PF: > { %s15_s18 = sadd.s32 1, %s1486_s18  }
 0x342   : > { %p12_p4 = scmp.ge.s32.totalorder %s15_s18, 4  }
 0x344   :  { %14 = sbr.rel (!%p12_p4) target bundleno = 1 (0x1), region = 70 }

</bundles_post_ra>
